<compile_context>
chip_gen: v6e
topology: v6e:2x2x1
jax: 0.10.0
libtpu: 0.0.40
codegen_flags: <defaults>
</compile_context>

<pallas_src>
import jax
import jax.numpy as jnp
import numpy as np
from jax import lax
from jax.experimental import pallas as pl
from jax.experimental.pallas import tpu as pltpu

C_IN, C_OUT, K = 16, 120, 5
K_FLAT = C_IN * K * K          # 400 (contraction size)
BM_MAX = 2048                  # max batch rows per grid step


def _c5_kernel(x_ref, w_ref, b_ref, o_ref):
    """One batch block: (bm, 400) @ (400, 120) + bias.

    x_ref : (bm, 400)   VMEM  flattened input rows
    w_ref : (400, 120)  VMEM  flattened conv weight (resident across steps)
    b_ref : (1, 120)    VMEM  bias row
    o_ref : (bm, 120)   VMEM  output rows
    """
    acc = jnp.dot(x_ref[...], w_ref[...],
                  preferred_element_type=jnp.float32,
                  precision=lax.Precision.HIGHEST)
    o_ref[...] = (acc + b_ref[...]).astype(o_ref.dtype)


def _round_up(n, m):
    return (n + m - 1) // m * m


def _choose_bm(rows):
    """Batch block: multiple of 8, <= rows, <= BM_MAX, and >= 2 grid steps for
    larger batches so v7x can shard the parallel axis across both cores."""
    if rows <= 16:
        return rows
    return min(BM_MAX, _round_up(pl.cdiv(rows, 2), 8))


def prepare_params(weight, bias):
    """One-time weight prep: (120,16,5,5) -> (400,120), bias -> (1,120)."""
    w_t = jnp.asarray(weight).reshape(C_OUT, K_FLAT).T       # (400, 120)
    b_row = jnp.asarray(bias).reshape(1, C_OUT)               # (1, 120)
    return w_t, b_row


@jax.jit
def c5_forward(x, w_t, b_row):
    """x: (B, 16, 5, 5) f32 -> (B, 120, 1, 1) f32."""
    B = x.shape[0]
    assert x.shape[1:] == (C_IN, K, K)

    xf = x.reshape(B, K_FLAT)
    rows = _round_up(B, 8)
    if rows != B:                       # tiny (<8 row) pad, only when needed
        xf = jnp.pad(xf, ((0, rows - B), (0, 0)))

    bm = _choose_bm(rows)
    grid = (pl.cdiv(rows, bm),)         # last block may overhang -> edge masked

    out = pl.pallas_call(
        _c5_kernel,
        out_shape=jax.ShapeDtypeStruct((rows, C_OUT), x.dtype),
        grid_spec=pltpu.PrefetchScalarGridSpec(
            num_scalar_prefetch=0,
            grid=grid,
            in_specs=[
                pl.BlockSpec((bm, K_FLAT), lambda i: (i, 0)),
                pl.BlockSpec((K_FLAT, C_OUT), lambda i: (0, 0)),
                pl.BlockSpec((1, C_OUT), lambda i: (0, 0)),
            ],
            out_specs=pl.BlockSpec((bm, C_OUT), lambda i: (i, 0)),
        ),
        compiler_params=pltpu.CompilerParams(
            dimension_semantics=("parallel",)),
    )(xf, w_t, b_row)

    if rows != B:
        out = out[:B]                   # row slice only; lanes stay at 120
    return out.reshape(B, C_OUT, 1, 1)


def c5_reference(x, weight, bias):
    y = lax.conv_general_dilated(
        x, weight, window_strides=(1, 1), padding="VALID",
        dimension_numbers=("NCHW", "OIHW", "NCHW"),
        precision=lax.Precision.HIGHEST)
    return y + bias.reshape(1, C_OUT, 1, 1)


if __name__ == "__main__":
    key = jax.random.PRNGKey(0)
    kx, kw, kb = jax.random.split(key, 3)

    B = 2
    x = jax.random.normal(kx, (B, C_IN, K, K), dtype=jnp.float32)
    # Deterministic small-scale parameter init (roughly PyTorch's 1/sqrt(fan_in)).
    weight = 0.05 * jax.random.normal(kw, (C_OUT, C_IN, K, K), dtype=jnp.float32)
    bias = 0.05 * jax.random.normal(kb, (C_OUT,), dtype=jnp.float32)

    w_t, b_row = prepare_params(weight, bias)
    y = c5_forward(x, w_t, b_row)
    y = jax.block_until_ready(y)

    y_ref = c5_reference(x, weight, bias)
    np.testing.assert_allclose(np.asarray(y), np.asarray(y_ref),
                               rtol=1e-4, atol=1e-4)
    assert y.shape == (B, C_OUT, 1, 1)
    print("KERNEL_OK")
</pallas_src>

<mosaic_0001>
module attributes {stable_mosaic.version = 11 : i64} {
  func.func @_c5_kernel(%arg0: i32, %arg1: memref<8x400xf32, #tpu.memory_space<vmem>>, %arg2: memref<400x120xf32, #tpu.memory_space<vmem>>, %arg3: memref<1x120xf32, #tpu.memory_space<vmem>>, %arg4: memref<8x120xf32, #tpu.memory_space<vmem>>) attributes {dimension_semantics = [#tpu.dimension_semantics<parallel>], iteration_bounds = array<i64: 1>, scalar_prefetch = 0 : i64, scratch_operands = 0 : i64, tpu.core_type = #tpu.core_type<tc>, window_params = [{transform_indices = @transform_0, window_bounds = array<i64: 8, 400>}, {pipeline_mode = #tpu.pipeline_mode<synchronous>, transform_indices = @transform_1, window_bounds = array<i64: 400, 120>}, {pipeline_mode = #tpu.pipeline_mode<synchronous>, transform_indices = @transform_2, window_bounds = array<i64: 1, 120>}, {transform_indices = @transform_3, window_bounds = array<i64: 8, 120>}]} {
    %c0 = arith.constant 0 : index
    %c0_0 = arith.constant 0 : index
    %0 = vector.load %arg1[%c0, %c0_0] : memref<8x400xf32, #tpu.memory_space<vmem>>, vector<8x400xf32>
    %c0_1 = arith.constant 0 : index
    %c0_2 = arith.constant 0 : index
    %1 = vector.load %arg2[%c0_1, %c0_2] : memref<400x120xf32, #tpu.memory_space<vmem>>, vector<400x120xf32>
    %cst = arith.constant dense<0.000000e+00> : vector<8x120xf32>
    %2 = tpu.matmul %0, %1, %cst {dimension_numbers = #tpu.dot_dimension_numbers<[1], [0], [0], [1], [0, 0, 1, 1], [], []>, precision = #tpu.contract_precision<fp32>} : vector<8x400xf32>, vector<400x120xf32>, vector<8x120xf32> -> vector<8x120xf32>
    %c0_3 = arith.constant 0 : index
    %c0_4 = arith.constant 0 : index
    %3 = vector.load %arg3[%c0_3, %c0_4] : memref<1x120xf32, #tpu.memory_space<vmem>>, vector<1x120xf32>
    %4 = vector.broadcast %3 : vector<1x120xf32> to vector<8x120xf32>
    %5 = arith.addf %2, %4 : vector<8x120xf32>
    %c0_5 = arith.constant 0 : index
    %c0_6 = arith.constant 0 : index
    %6 = vector.load %arg4[%c0_5, %c0_6] : memref<8x120xf32, #tpu.memory_space<vmem>>, vector<8x120xf32>
    tpu.vector_store %arg4[%c0_5, %c0_6], %5 {strides = array<i32>} : memref<8x120xf32, #tpu.memory_space<vmem>>, vector<8x120xf32>,
    return
  }
  func.func @transform_0(%arg0: i32) -> (i32, i32) {
    %c0_i32 = arith.constant 0 : i32
    %c0_i32_0 = arith.constant 0 : i32
    return %arg0, %c0_i32 : i32, i32
  }
  func.func @transform_1(%arg0: i32) -> (i32, i32) {
    %c0_i32 = arith.constant 0 : i32
    %c0_i32_0 = arith.constant 0 : i32
    %c0_i32_1 = arith.constant 0 : i32
    return %c0_i32, %c0_i32_0 : i32, i32
  }
  func.func @transform_2(%arg0: i32) -> (i32, i32) {
    %c0_i32 = arith.constant 0 : i32
    %c0_i32_0 = arith.constant 0 : i32
    %c0_i32_1 = arith.constant 0 : i32
    return %c0_i32, %c0_i32_0 : i32, i32
  }
  func.func @transform_3(%arg0: i32) -> (i32, i32) {
    %c0_i32 = arith.constant 0 : i32
    %c0_i32_0 = arith.constant 0 : i32
    return %arg0, %c0_i32 : i32, i32
  }
}

</mosaic_0001>

<bundles_post_ra>
// kernel: c5_forward.1
= control target key start
LH: loop header
LB: loop body
LE: loop exit
PB: predicated region body
PF: predicated region fallthrough
CT: control target
= control target key end

     0   :  { %vm75_vm0 = vcmask 130048   ;;  %vm1621_vm1 = vcmask 982016   ;;  %s3038_s1 = inlined_call_operand.vmem [shape: f32[400,120], index: 1, kind: input, shape index: {}]   ;;  %s3039_s0 = inlined_call_operand.vmem [shape: f32[8,400], index: 0, kind: input, shape index: {}]   ;;  %s3040_s2 = inlined_call_operand.vmem [shape: f32[1,120], index: 2, kind: input, shape index: {}]   ;;  %s3041_s3 = inlined_call_operand.vmem [shape: f32[8,120], index: 3, kind: output, shape index: {}]  }
   0x1   :  { %v49_v0 = vld [vmem:[%s3038_s1 + $0xf8] sm:$0xff]  ;;  %v48_v2 = vld [vmem:[%s3038_s1 + $0xf0] sm:$0xff]  ;;  %v47_v7 = vld [vmem:[%s3038_s1 + $0xe8] sm:$0xff] }
   0x2   :  { %v33_v1 = vld [vmem:[%s3038_s1 + $0x78] sm:$0xff]  ;;  %v1869_v3 = vand.u32 4294901760, %v49_v0  ;;  %v1873_v5 = vand.u32 4294901760, %v48_v2  ;;  %v32_v6 = vld [vmem:[%s3038_s1 + $0x70] sm:$0xff]  ;;  %v31_v8 = vld [vmem:[%s3038_s1 + $0x68] sm:$0xff]  ;;  %v1886_v10 = vand.u32 4294901760, %v47_v7 }
   0x3   :  { %v1871_v4 = vand.u32 4294901760, %v33_v1  ;;  %v1884_v9 = vand.u32 4294901760, %v32_v6  ;;  %v1888_v11 = vand.u32 4294901760, %v31_v8  ;;  %v46_v12 = vld [vmem:[%s3038_s1 + $0xe0] sm:$0xff]  ;;  %v45_v14 = vld [vmem:[%s3038_s1 + $0xd8] sm:$0xff]  ;;  %v1917_v20 = vld [vmem:[%s3038_s1 + $0xd0] sm:$0xff] }
   0x4   :  { %v30_v13 = vld [vmem:[%s3038_s1 + $0x60] sm:$0xff]  ;;  %1628 = vmatprep.subr.mxu0 %v1869_v3  ;;  %v1900_v15 = vand.u32 4294901760, %v46_v12  ;;  %v1904_v17 = vand.u32 4294901760, %v45_v14  ;;  %v1907_v18 = vsub.f32 %v49_v0, %v1869_v3  ;;  %v1912_v19 = vld [vmem:[%s3038_s1 + $0x58] sm:$0xff]  ;;  %v1922_v21 = vld [vmem:[%s3038_s1 + $0x50] sm:$0xff]  ;;  %v1932_v24 = vand.u32 4294901760, %v1917_v20 }
   0x5   :  { %v1902_v16 = vand.u32 4294901760, %v30_v13  ;;  %1629 = vmatpush3.msra.mxu0 %v1871_v4  ;;  %v1926_v22 = vand.u32 4294901760, %v1912_v19  ;;  %v1929_v23 = vsub.f32 %v33_v1, %v1871_v4  ;;  %v1935_v25 = vsub.f32 %v48_v2, %v1873_v5  ;;  %v1940_v26 = vld [vmem:[%s3038_s1 + $0xc8] sm:$0xff]  ;;  %v1950_v28 = vld [vmem:[%s3038_s1 + $0xc0] sm:$0xff]  ;;  %v2002_v46 = vld [vmem:[%s3038_s1 + $0xb8] sm:$0xff] }
   0x6   :  { %v1945_v27 = vld [vmem:[%s3038_s1 + $0x48] sm:$0xff]  ;;  %1630 = vmatprep.subr.mxu0 %v1873_v5  ;;  %v3055_v29 = vand.u32 4294901760, %v1907_v18  ;;  %v1955_v30 = vand.u32 4294901760, %v1922_v21  ;;  %v1958_v31 = vsub.f32 %v32_v6, %v1884_v9  ;;  %v1961_v32 = vand.u32 4294901760, %v1940_v26  ;;  %v1975_v37 = vld [vmem:[%s3038_s1 + $0x40] sm:$0xff]  ;;  %v2015_v51 = vld [vmem:[%s3038_s1 + $0x38] sm:$0xff] }
   0x7   :  { %1631 = vmatpush3.msra.mxu0 %v1884_v9  ;;  %v3054_v33 = vand.u32 4294901760, %v1929_v23  ;;  %v3052_v34 = vand.u32 4294901760, %v1935_v25  ;;  %v1967_v35 = vsub.f32 %v47_v7, %v1886_v10  ;;  %v1970_v36 = vand.u32 4294901760, %v1945_v27  ;;  %v2025_v56 = vld [vmem:[%s3038_s1 + $0xb0] sm:$0xff]  ;;  %v2055_v2 = vld [vmem:[%s3038_s1 + $0xa8] sm:$0xff] }
   0x8   :  { %3118 = vst [vmem:[#allocation2_spill] sm:$0xff] %v1955_v30  ;;  %3119 = vst [vmem:[#allocation3_spill] sm:$0xff] %v1961_v32  ;;  %1632 = vmatprep.subr.mxu0 %v1886_v10  ;;  %v307_v38 = vsub.f32 %v1907_v18, %v3055_v29  ;;  %v3051_v39 = vand.u32 4294901760, %v1958_v31  ;;  %v1983_v40 = vsub.f32 %v31_v8, %v1888_v11  ;;  %v1986_v41 = vand.u32 4294901760, %v1950_v28  ;;  %v2040_v61 = vld [vmem:[%s3038_s1 + $0x30] sm:$0xff] }
   0x9   :  { %3120 = vst [vmem:[#allocation4_spill] sm:$0xff] %v1970_v36  ;;  %1633 = vmatpush3.msra.mxu0 %v1888_v11  ;;  %v195_v42 = vsub.f32 %v1929_v23, %v3054_v33  ;;  %v314_v43 = vsub.f32 %v1935_v25, %v3052_v34  ;;  %v3049_v44 = vand.u32 4294901760, %v1967_v35  ;;  %v1997_v45 = vsub.f32 %v46_v12, %v1900_v15  ;;  %v2191_v33 = vld [vmem:[%s3038_s1 + $0x88] sm:$0xff] }
   0xa   :  { %3121 = vst [vmem:[#allocation5_spill] sm:$0xff] %v1986_v41  ;;  %1634 = vmatprep.subr.mxu0 %v1900_v15  ;;  %v308_v47 = vand.u32 4294901760, %v307_v38  ;;  %v202_v48 = vsub.f32 %v1958_v31, %v3051_v39  ;;  %v3047_v49 = vand.u32 4294901760, %v1983_v40  ;;  %v2010_v50 = vand.u32 4294901760, %v1975_v37 }
   0xb   :  { %1635 = vmatpush3.msra.mxu0 %v1902_v16  ;;  %v196_v52 = vand.u32 4294901760, %v195_v42  ;;  %v315_v53 = vand.u32 4294901760, %v314_v43  ;;  %v321_v54 = vsub.f32 %v1967_v35, %v3049_v44  ;;  %v3046_v55 = vand.u32 4294901760, %v1997_v45  ;;  %v2164_v44 = vld [vmem:[%s3038_s1 + $0x90] sm:$0xff] }
   0xc   :  { %3122 = vst [vmem:[#allocation6_spill] sm:$0xff] %v2010_v50  ;;  %1636 = vmatprep.subr.mxu0 %v1904_v17  ;;  %1663 = vmatprep.subr.mxu1 %v308_v47  ;;  %v203_v57 = vand.u32 4294901760, %v202_v48  ;;  %v209_v58 = vsub.f32 %v1983_v40, %v3047_v49  ;;  %v2032_v59 = vsub.f32 %v30_v13, %v1902_v16  ;;  %v2035_v60 = vand.u32 4294901760, %v2002_v46  ;;  %v2069_v13 = vld [vmem:[%s3038_s1 + $0x28] sm:$0xff]  ;;  %v2148_v49 = vld [vmem:[%s3038_s1 + $0x18] sm:$0xff] }
   0xd   :  { %1637 = vmatpush3.msra.mxu0 %v1926_v22  ;;  %1664 = vmatpush3.msra.mxu1 %v196_v52  ;;  %v322_v62 = vand.u32 4294901760, %v321_v54  ;;  %v328_v63 = vsub.f32 %v1997_v45, %v3046_v55  ;;  %v2047_v0 = vsub.f32 %v45_v14, %v1904_v17  ;;  %v2050_v1 = vand.u32 4294901760, %v2015_v51 }
   0xe   :  { %3123 = vst [vmem:[#allocation7_spill] sm:$0xff] %v2035_v60  ;;  %1638 = vmatprep.subr.mxu0 %v1932_v24  ;;  %1665 = vmatprep.subr.mxu1 %v315_v53  ;;  %v210_v6 = vand.u32 4294901760, %v209_v58  ;;  %v3044_v7 = vand.u32 4294901760, %v2032_v59  ;;  %v2061_v8 = vsub.f32 %v1912_v19, %v1926_v22  ;;  %v2064_v12 = vand.u32 4294901760, %v2025_v56 }
   0xf   :  { %3124 = vst [vmem:[#allocation8_spill] sm:$0xff] %v2050_v1  ;;  %1639 = vmatpush3.msra.mxu0 %v1955_v30  ;;  %1666 = vmatpush3.msra.mxu1 %v203_v57  ;;  %v329_v14 = vand.u32 4294901760, %v328_v63  ;;  %v3042_v38 = vand.u32 4294901760, %v2047_v0  ;;  %v2075_v42 = vsub.f32 %v1917_v20, %v1932_v24  ;;  %v2078_v19 = vand.u32 4294901760, %v2040_v61  ;;  %v2095_v20 = vld [vmem:[%s3038_s1 + $0xa0] sm:$0xff] }
  0x10   :  { %3125 = vst [vmem:[#allocation9_spill] sm:$0xff] %v2064_v12  ;;  %1640 = vmatprep.subr.mxu0 %v1961_v32  ;;  %1667 = vmatprep.subr.mxu1 %v322_v62  ;;  %v216_v43 = vsub.f32 %v2032_v59, %v3044_v7  ;;  %v3043_v47 = vand.u32 4294901760, %v2061_v8  ;;  %v2087_v48 = vsub.f32 %v1922_v21, %v1955_v30  ;;  %v2090_v52 = vand.u32 4294901760, %v2055_v2 }
  0x11   :  { %3126 = vst [vmem:[#allocation10_spill] sm:$0xff] %v2078_v19  ;;  %1641 = vmatpush3.msra.mxu0 %v1970_v36  ;;  %1668 = vmatpush3.msra.mxu1 %v210_v6  ;;  %v335_v53 = vsub.f32 %v2047_v0, %v3042_v38  ;;  %v3045_v54 = vand.u32 4294901760, %v2075_v42  ;;  %v2104_v21 = vsub.f32 %v1940_v26, %v1961_v32  ;;  %v2107_v57 = vand.u32 4294901760, %v2069_v13  ;;  %v2121_v26 = vld [vmem:[%s3038_s1 + $0x20] sm:$0xff] }
  0x12   :  { %3127 = vst [vmem:[#allocation11_spill] sm:$0xff] %v2090_v52  ;;  %1642 = vmatprep.subr.mxu0 %v1986_v41  ;;  %1669 = vmatprep.subr.mxu1 %v329_v14  ;;  %v217_v58 = vand.u32 4294901760, %v216_v43  ;;  %v223_v62 = vsub.f32 %v2061_v8, %v3043_v47  ;;  %v3048_v63 = vand.u32 4294901760, %v2087_v48  ;;  %v2116_v6 = vsub.f32 %v1945_v27, %v1970_v36  ;;  %v2134_v27 = vld [vmem:[%s3038_s1 + $0x98] sm:$0xff] }
  0x13   :  { %3128 = vst [vmem:[#allocation12_spill] sm:$0xff] %v2107_v57  ;;  %1643 = vmatpush3.msra.mxu0 %v2010_v50  ;;  %v336_v38 = vand.u32 4294901760, %v335_v53  ;;  %v342_v14 = vsub.f32 %v2075_v42, %v3045_v54  ;;  %v3050_v43 = vand.u32 4294901760, %v2104_v21  ;;  %v2129_v47 = vand.u32 4294901760, %v2095_v20 }
  0x14   :  { %1670 = vmatpush3.msra.mxu1 %v217_v58  ;;  %1644 = vmatprep.subr.mxu0 %v2035_v60  ;;  %v224_v7 = vand.u32 4294901760, %v223_v62  ;;  %v230_v53 = vsub.f32 %v2087_v48, %v3048_v63  ;;  %v3053_v54 = vand.u32 4294901760, %v2116_v6  ;;  %v2143_v55 = vsub.f32 %v1950_v28, %v1986_v41  ;;  %v14_v41 = vld [vmem:[%s3039_s0] sm:$0xff] }
  0x15   :  { %3129 = vst [vmem:[#allocation13_spill] sm:$0xff] %v2129_v47  ;;  %1671 = vmatprep.subr.mxu1 %v336_v38  ;;  %1645 = vmatpush3.msra.mxu0 %v2050_v1  ;;  %v343_v58 = vand.u32 4294901760, %v342_v14  ;;  %v349_v62 = vsub.f32 %v2104_v21, %v3050_v43  ;;  %v2155_v63 = vand.u32 4294901760, %v2121_v26  ;;  %v2159_v28 = vsub.f32 %v1975_v37, %v2010_v50  ;;  %v2177_v37 = vld [vmem:[%s3038_s1 + $0x10] sm:$0xff] }
  0x16   :  { %1672 = vmatpush3.msra.mxu1 %v224_v7  ;;  %1646 = vmatprep.subr.mxu0 %v2064_v12  ;;  %v231_v38 = vand.u32 4294901760, %v230_v53  ;;  %v237_v14 = vsub.f32 %v2116_v6, %v3053_v54  ;;  %v3058_v43 = vand.u32 4294901760, %v2143_v55  ;;  %v2172_v39 = vand.u32 4294901760, %v2134_v27 }
  0x17   :  { %3130 = vst [vmem:[#allocation14_spill] sm:$0xff] %v2155_v63  ;;  %1673 = vmatprep.subr.mxu1 %v343_v58  ;;  %1647 = vmatpush3.msra.mxu0 %v2078_v19  ;;  %v350_v7 = vand.u32 4294901760, %v349_v62  ;;  %v3059_v53 = vand.u32 4294901760, %v2159_v28  ;;  %v2183_v34 = vsub.f32 %v2002_v46, %v2035_v60  ;;  %v2186_v54 = vand.u32 4294901760, %v2148_v49 }
  0x18   :  { %1674 = vmatpush3.msra.mxu1 %v231_v38  ;;  %1648 = vmatprep.subr.mxu0 %v2090_v52  ;;  %v238_v58 = vand.u32 4294901760, %v237_v14  ;;  %v356_v62 = vsub.f32 %v2143_v55, %v3058_v43  ;;  %v2199_v46 = vsub.f32 %v2015_v51, %v2050_v1  ;;  %v2202_v29 = vand.u32 4294901760, %v2164_v44  ;;  %v2219_v51 = vld [vmem:[%s3038_s1 + $0x8] sm:$0xff] }
  0x19   :  { %3131 = vst [vmem:[#allocation15_spill] sm:$0xff] %v2186_v54  ;;  %1675 = vmatprep.subr.mxu1 %v350_v7  ;;  %1649 = vmatpush3.msra.mxu0 %v2107_v57  ;;  %v244_v38 = vsub.f32 %v2159_v28, %v3059_v53  ;;  %v2211_v60 = vsub.f32 %v2025_v56, %v2064_v12  ;;  %v2214_v43 = vand.u32 4294901760, %v2177_v37  ;;  %v2228_v56 = vand.u32 4294901760, %v2191_v33  ;;  %v2233_v12 = vld [vmem:[%s3038_s1 + $0x80] sm:$0xff] }
  0x1a   :  { %3132 = vst [vmem:[#allocation16_spill] sm:$0xff] %v2202_v29  ;;  %1676 = vmatpush3.msra.mxu1 %v238_v58  ;;  %1650 = vmatprep.subr.mxu0 %v2129_v47  ;;  %v357_v7 = vand.u32 4294901760, %v356_v62  ;;  %v2225_v14 = vsub.f32 %v2040_v61, %v2078_v19  ;;  %v3136_v1 = vand.u32 4294901760, %v2183_v34  ;;  %v2242_v61 = vsub.f32 %v2055_v2, %v2090_v52  ;;  %v2259_v2 = vld [vmem:[%s3038_s1] sm:$0xff] }
  0x1b   :  { %3133 = vst [vmem:[#allocation17_spill] sm:$0xff] %v2214_v43  ;;  %3135 = vst [vmem:[#allocation19_spill] sm:$0xff] %v2228_v56  ;;  %1651 = vmatpush3.msra.mxu0 %v2155_v63  ;;  %v245_v58 = vand.u32 4294901760, %v244_v38  ;;  %v3076_v53 = vand.u32 4294901760, %v2211_v60  ;;  %v3138_v19 = vand.u32 4294901760, %v2199_v46  ;;  %v2250_v38 = vand.u32 4294901760, %v2219_v51 }
  0x1c   :  { %3134 = vst [vmem:[#allocation18_spill] sm:$0xff] %v2225_v14  ;;  %v363_v62 = vsub.f32 %v2183_v34, %v3136_v1  ;;  %3137 = vst [vmem:[#allocation20_spill] sm:$0xff] %v2242_v61  ;;  %1677 = vmatprep.subr.mxu1 %v357_v7  ;;  %1652 = vmatprep.subr.mxu0 %v2172_v39  ;;  %v2254_v1 = vsub.f32 %v2069_v13, %v2107_v57  ;;  %v2267_v52 = vand.u32 4294901760, %v2233_v12  ;;  %v15_v13 = vld [vmem:[%s3039_s0 + $0x8] sm:$0xff] }
  0x1d   :  { %v251_v50 = vsub.f32 %v2199_v46, %v3138_v19  ;;  %1678 = vmatpush3.msra.mxu1 %v245_v58  ;;  %1653 = vmatpush3.msra.mxu0 %v2186_v54  ;;  %v370_v19 = vsub.f32 %v2211_v60, %v3076_v53  ;;  %v3139_v58 = vand.u32 4294901760, %v2225_v14  ;;  %v2279_v53 = vsub.f32 %v2095_v20, %v2129_v47 }
  0x1e   :  { %v364_v7 = vand.u32 4294901760, %v363_v62  ;;  %1654 = vmatprep.subr.mxu0 %v2202_v29  ;;  %v2293_v36 = vsub.f32 %v2121_v26, %v2155_v63  ;;  %v2308_v26 = vand.u32 4294901760, %v14_v41 }
  0x1f   :  { %v252_v57 = vand.u32 4294901760, %v251_v50  ;;  %v258_v62 = vsub.f32 %v2225_v14, %v3139_v58  ;;  %v371_v32 = vand.u32 4294901760, %v370_v19  ;;  %1655 = vmatpush3.msra.mxu0 %v2214_v43  ;;  %v3140_v50 = vand.u32 4294901760, %v2242_v61 }
  0x20   :  { %1679 = vmatprep.subr.mxu1 %v364_v7  ;;  %v2289_v58 = vand.u32 4294901760, %v2259_v2  ;;  %1656 = vmatprep.subr.mxu0 %v2228_v56  ;;  %v3141_v7 = vand.u32 4294901760, %v2254_v1  ;;  %v3087_v47 = vand.u32 4294901760, %v2279_v53  ;;  %v2300_v14 = vand.u32 4294901760, %v15_v13  ;;  %3143 = vst [vmem:[#allocation22_spill] sm:$0xff] %v2308_v26 }
  0x21   :  { %v377_v30 = vsub.f32 %v2242_v61, %v3140_v50  ;;  %1680 = vmatpush3.msra.mxu1 %v252_v57  ;;  %v259_v20 = vand.u32 4294901760, %v258_v62  ;;  %1657 = vmatpush3.msra.mxu0 %v2250_v38  ;;  %v3088_v61 = vand.u32 4294901760, %v2293_v36  ;;  %v2306_v57 = vsub.f32 %v2134_v27, %v2172_v39 }
  0x22   :  { %v265_v19 = vsub.f32 %v2254_v1, %v3141_v7  ;;  %3142 = vst [vmem:[#allocation21_spill] sm:$0xff] %v2300_v14  ;;  %1681 = vmatprep.subr.mxu1 %v371_v32  ;;  %1658 = vmatprep.subr.mxu0 %v2267_v52  ;;  %v384_v7 = vsub.f32 %v2279_v53, %v3087_v47 }
  0x23   :  { %v378_v50 = vand.u32 4294901760, %v377_v30  ;;  %1682 = vmatpush3.msra.mxu1 %v259_v20  ;;  %v2315_v30 = vsub.f32 %v15_v13, %v2300_v14  ;;  %v2319_v32 = vsub.f32 %v2148_v49, %v2186_v54  ;;  %1659 = vmatpush3.msra.mxu0 %v2289_v58  ;;  %v272_v27 = vsub.f32 %v2293_v36, %v3088_v61 }
  0x24   :  { %v266_v62 = vand.u32 4294901760, %v265_v19  ;;  %v2327_v19 = vsub.f32 %v14_v41, %v2308_v26  ;;  %v2331_v13 = vsub.f32 %v2164_v44, %v2202_v29  ;;  %v385_v47 = vand.u32 4294901760, %v384_v7  ;;  %1698 = vmatprep.subr.mxu0 %v1907_v18  ;;  %416 = vmatprep.mubr.f32.mxu1 %v2300_v14 }
  0x25   :  { %1683 = vmatprep.subr.mxu1 %v378_v50  ;;  %v3093_v49 = vand.u32 4294901760, %v2315_v30  ;;  %v3096_v50 = vand.u32 4294901760, %v2319_v32  ;;  %v2338_v61 = vsub.f32 %v2177_v37, %v2214_v43  ;;  %v273_v20 = vand.u32 4294901760, %v272_v27 }
  0x26   :  { %1684 = vmatpush3.msra.mxu1 %v266_v62  ;;  %v3144_v41 = vand.u32 4294901760, %v2306_v57  ;;  %v3145_v62 = vand.u32 4294901760, %v2327_v19  ;;  %v3146_v14 = vand.u32 4294901760, %v2331_v13  ;;  %v2365_v43 = vsub.f32 %v2219_v51, %v2250_v38 }
  0x27   :  { %1685 = vmatprep.subr.mxu1 %v385_v47  ;;  %v178_v7 = vsub.f32 %v2315_v30, %v3093_v49  ;;  %v279_v37 = vsub.f32 %v2319_v32, %v3096_v50  ;;  %v3148_v29 = vand.u32 4294901760, %v2338_v61 }
  0x28   :  { %v391_v54 = vsub.f32 %v2306_v57, %v3144_v41  ;;  %v2355_v41 = vsub.f32 %v2191_v33, %v2228_v56  ;;  %1686 = vmatpush3.msra.mxu1 %v273_v20  ;;  %v184_v47 = vsub.f32 %v2327_v19, %v3145_v62  ;;  %v398_v49 = vsub.f32 %v2331_v13, %v3146_v14 }
  0x29   :  { %3147 = vst [vmem:[#allocation23_spill] sm:$0xff] %v2365_v43  ;;  %v179_v50 = vand.u32 4294901760, %v178_v7  ;;  %v280_v27 = vand.u32 4294901760, %v279_v37  ;;  %v286_v33 = vsub.f32 %v2338_v61, %v3148_v29  ;;  %v3103_v62 = vand.u32 4294901760, %v2365_v43 }
  0x2a   :  { %v392_v44 = vand.u32 4294901760, %v391_v54  ;;  %v3104_v54 = vand.u32 4294901760, %v2355_v41  ;;  %v185_v20 = vand.u32 4294901760, %v184_v47  ;;  %v399_v56 = vand.u32 4294901760, %v398_v49 }
  0x2b   :  { %v2374_v14 = vsub.f32 %v2233_v12, %v2267_v52  ;;  %180 = vmatprep.mubr.f32.mxu0 %v179_v50  ;;  %v287_v51 = vand.u32 4294901760, %v286_v33  ;;  %v2381_v29 = vsub.f32 %v2259_v2, %v2289_v58  ;;  %v293_v49 = vsub.f32 %v2365_v43, %v3103_v62  ;;  %v3151_v33 = vld [vmem:[#allocation18_spill] sm:$0xff]  ;;  %v3164_v62 = vld [vmem:[#allocation13_spill] sm:$0xff] }
  0x2c   :  { %1687 = vmatprep.subr.mxu1 %v392_v44  ;;  %v405_v7 = vsub.f32 %v2355_v41, %v3104_v54  ;;  %186 = vmatmul.mubr.f32.vlgmr.msra.gmra.mxu0 %v185_v20  ;;  %v3152_v20 = vld [vmem:[#allocation2_spill] sm:$0xff]  ;;  %v3165_v54 = vand.u32 4294901760, %v1907_v18  ;;  %v3173_v18 = vand.u32 4294901760, %v1967_v35 }
  0x2d   :  { %3149 = vst [vmem:[#allocation24_spill] sm:$0xff] %v2374_v14  ;;  %1688 = vmatpush3.msra.mxu1 %v280_v27  ;;  %3150 = vst [vmem:[#allocation25_spill] sm:$0xff] %v2381_v29  ;;  %v3102_v12 = vand.u32 4294901760, %v2374_v14  ;;  %1699 = vmatpush3.msra.mxu0 %v1929_v23  ;;  %v3101_v44 = vand.u32 4294901760, %v2381_v29  ;;  %v294_v37 = vand.u32 4294901760, %v293_v49  ;;  %v3155_v49 = vld [vmem:[#allocation4_spill] sm:$0xff] }
  0x2e   :  { %1689 = vmatprep.subr.mxu1 %v399_v56  ;;  %v406_v50 = vand.u32 4294901760, %v405_v7  ;;  %1700 = vmatprep.subr.mxu0 %v1935_v25  ;;  %v3154_v7 = vld [vmem:[#allocation3_spill] sm:$0xff] }
  0x2f   :  { %1690 = vmatpush3.msra.mxu1 %v287_v51  ;;  %v412_v2 = vsub.f32 %v2374_v14, %v3102_v12  ;;  %553 = vmatprep.mubr.f32.mxu0 %v2315_v30  ;;  %v300_v56 = vsub.f32 %v2381_v29, %v3101_v44  ;;  %v3153_v51 = vld [vmem:[#allocation20_spill] sm:$0xff]  ;;  %v3162_v44 = vld [vmem:[#allocation11_spill] sm:$0xff] }
  0x30   :  { %1701 = vmatpush3.msra.mxu0 %v1958_v31  ;;  %1691 = vmatprep.subr.mxu1 %v406_v50  ;;  %v3156_v50 = vld [vmem:[#allocation5_spill] sm:$0xff]  ;;  %v3163_v12 = vld [vmem:[#allocation12_spill] sm:$0xff] }
  0x31   :  { %1702 = vmatprep.subr.mxu0 %v1967_v35  ;;  %1692 = vmatpush3.msra.mxu1 %v294_v37  ;;  %v413_v27 = vand.u32 4294901760, %v412_v2  ;;  %v301_v47 = vand.u32 4294901760, %v300_v56  ;;  %v3157_v37 = vld [vmem:[#allocation6_spill] sm:$0xff]  ;;  %v3158_v2 = vld [vmem:[#allocation7_spill] sm:$0xff]  ;;  %v3159_v56 = vld [vmem:[#allocation8_spill] sm:$0xff]  ;;  %v3178_v35 = vand.u32 4294901760, %v2327_v19 }
  0x32   :  { %1703 = vmatpush3.msra.mxu0 %v1983_v40 }
  0x33   :  { %1693 = vmatprep.subr.mxu1 %v413_v27  ;;  %1704 = vmatprep.subr.mxu0 %v1997_v45  ;;  %v3160_v27 = vld [vmem:[#allocation9_spill] sm:$0xff] }
  0x34   :  { %1694 = vmatpush3.msra.mxu1 %v301_v47  ;;  %1705 = vmatpush3.msra.mxu0 %v2032_v59  ;;  %v3161_v47 = vld [vmem:[#allocation10_spill] sm:$0xff] }
  0x35   :  { %418 = vmatmul.mubr.f32.vlgmr.msra.gmra.mxu1 %v2308_v26  ;;  %1706 = vmatprep.subr.mxu0 %v2047_v0  ;;  %v3166_v26 = vld [vmem:[#allocation15_spill] sm:$0xff] }
  0x36   :  { %1733 = vmatprep.subr.mxu1 %v1869_v3  ;;  %1707 = vmatpush3.msra.mxu0 %v2061_v8 }
  0x37   :  { %1734 = vmatpush3.msra.mxu1 %v1871_v4  ;;  %1708 = vmatprep.subr.mxu0 %v2075_v42 }
  0x38   :  { %1735 = vmatprep.subr.mxu1 %v1873_v5  ;;  %1709 = vmatpush3.msra.mxu0 %v2087_v48 }
  0x39   :  { %1736 = vmatpush3.msra.mxu1 %v1884_v9  ;;  %1710 = vmatprep.subr.mxu0 %v2104_v21 }
  0x3a   :  { %1737 = vmatprep.subr.mxu1 %v1886_v10  ;;  %1711 = vmatpush3.msra.mxu0 %v2116_v6 }
  0x3b   :  { %1738 = vmatpush3.msra.mxu1 %v1888_v11  ;;  %1712 = vmatprep.subr.mxu0 %v2143_v55 }
  0x3c   :  { %1739 = vmatprep.subr.mxu1 %v1900_v15  ;;  %1713 = vmatpush3.msra.mxu0 %v2159_v28 }
  0x3d   :  { %1740 = vmatpush3.msra.mxu1 %v1902_v16  ;;  %1714 = vmatprep.subr.mxu0 %v2183_v34 }
  0x3e   :  { %1741 = vmatprep.subr.mxu1 %v1904_v17  ;;  %1715 = vmatpush3.msra.mxu0 %v2199_v46 }
  0x3f   :  { %1742 = vmatpush3.msra.mxu1 %v1926_v22  ;;  %1716 = vmatprep.subr.mxu0 %v2211_v60 }
  0x40   :  { %1743 = vmatprep.subr.mxu1 %v1932_v24  ;;  %1717 = vmatpush3.msra.mxu0 %v3151_v33 }
  0x41   :  { %1744 = vmatpush3.msra.mxu1 %v3152_v20  ;;  %1718 = vmatprep.subr.mxu0 %v3153_v51 }
  0x42   :  { %1745 = vmatprep.subr.mxu1 %v3154_v7  ;;  %1719 = vmatpush3.msra.mxu0 %v2254_v1 }
  0x43   :  { %1746 = vmatpush3.msra.mxu1 %v3155_v49  ;;  %1720 = vmatprep.subr.mxu0 %v2279_v53 }
  0x44   :  { %1747 = vmatprep.subr.mxu1 %v3156_v50  ;;  %1721 = vmatpush3.msra.mxu0 %v2293_v36 }
  0x45   :  { %1748 = vmatpush3.msra.mxu1 %v3157_v37  ;;  %1722 = vmatprep.subr.mxu0 %v2306_v57 }
  0x46   :  { %1749 = vmatprep.subr.mxu1 %v3158_v2  ;;  %1723 = vmatpush3.msra.mxu0 %v2319_v32 }
  0x47   :  { %1750 = vmatpush3.msra.mxu1 %v3159_v56  ;;  %1724 = vmatprep.subr.mxu0 %v2331_v13 }
  0x48   :  { %1751 = vmatprep.subr.mxu1 %v3160_v27  ;;  %1725 = vmatpush3.msra.mxu0 %v2338_v61 }
  0x49   :  { %1752 = vmatpush3.msra.mxu1 %v3161_v47  ;;  %1726 = vmatprep.subr.mxu0 %v2355_v41 }
  0x4a   :  { %1753 = vmatprep.subr.mxu1 %v3162_v44  ;;  %1727 = vmatpush3.msra.mxu0 %v2365_v43  ;;  %v3167_v43 = vand.u32 4294901760, %v1929_v23  ;;  %v3174_v23 = vand.u32 4294901760, %v1983_v40  ;;  %v3180_v40 = vand.u32 4294901760, %v2061_v8  ;;  %v63_v8 = vld [vmem:[%s3038_s1 + $0x168] sm:$0xff] }
  0x4b   :  { %1754 = vmatpush3.msra.mxu1 %v3163_v12  ;;  %1728 = vmatprep.subr.mxu0 %v2374_v14  ;;  %v3168_v12 = vld [vmem:[#allocation16_spill] sm:$0xff]  ;;  %v3172_v14 = vld [vmem:[#allocation19_spill] sm:$0xff] }
  0x4c   :  { %1755 = vmatprep.subr.mxu1 %v3164_v62  ;;  %1729 = vmatpush3.msra.mxu0 %v2381_v29  ;;  %v3169_v62 = vand.u32 4294901760, %v1935_v25  ;;  %v3170_v29 = vld [vmem:[#allocation17_spill] sm:$0xff]  ;;  %v3175_v25 = vand.u32 4294901760, %v1997_v45  ;;  %v3181_v45 = vand.u32 4294901760, %v2075_v42  ;;  %v3195_v42 = vand.u32 4294901760, %v2306_v57 }
  0x4d   :  { %1756 = vmatpush3.msra.mxu1 %v2155_v63  ;;  %556 = vmatmul.mubr.f32.vlgmr.msra.gmra.mxu0 %v2327_v19  ;;  %v3171_v63 = vand.u32 4294901760, %v1958_v31  ;;  %v3176_v31 = vand.u32 4294901760, %v2315_v30  ;;  %v3199_v57 = vand.u32 4294901760, %v2355_v41  ;;  %v3200_v30 = vld [vmem:[#allocation23_spill] sm:$0xff]  ;;  %v3202_v19 = vld [vmem:[#allocation12_spill] sm:$0xff]  ;;  %v3205_v41 = vld [vmem:[#allocation13_spill] sm:$0xff] }
  0x4e   :  { %1757 = vmatprep.subr.mxu1 %v2172_v39  ;;  %1768 = vmatprep.subr.mxu0 %v3165_v54  ;;  %v60_v54 = vld [vmem:[%s3038_s1 + $0x150] sm:$0xff] }
  0x4f   :  { %1758 = vmatpush3.msra.mxu1 %v3166_v26  ;;  %1769 = vmatpush3.msra.mxu0 %v3167_v43  ;;  %v3179_v43 = vand.u32 4294901760, %v2047_v0  ;;  %v3183_v0 = vand.u32 4294901760, %v2104_v21  ;;  %v3197_v21 = vand.u32 4294901760, %v2331_v13 }
  0x50   :  { %1759 = vmatprep.subr.mxu1 %v3168_v12  ;;  %1770 = vmatprep.subr.mxu0 %v3169_v62  ;;  %v3203_v62 = vld [vmem:[#allocation24_spill] sm:$0xff] }
  0x51   :  { %1760 = vmatpush3.msra.mxu1 %v3170_v29  ;;  %1771 = vmatpush3.msra.mxu0 %v3171_v63  ;;  %v3177_v63 = vand.u32 4294901760, %v2032_v59  ;;  %v3182_v59 = vand.u32 4294901760, %v2087_v48  ;;  %v3196_v48 = vand.u32 4294901760, %v2319_v32  ;;  %v3201_v32 = vand.u32 4294901760, %v3200_v30 }
  0x52   :  { %1761 = vmatprep.subr.mxu1 %v3172_v14  ;;  %1772 = vmatprep.subr.mxu0 %v3173_v18 }
  0x53   :  { %1762 = vmatpush3.msra.mxu1 %v2250_v38  ;;  %1773 = vmatpush3.msra.mxu0 %v3174_v23 }
  0x54   :  { %1763 = vmatprep.subr.mxu1 %v2267_v52  ;;  %1774 = vmatprep.subr.mxu0 %v3175_v25 }
  0x55   :  { %1764 = vmatpush3.msra.mxu1 %v2289_v58  ;;  %660 = vmatprep.mubr.f32.mxu1 %v3176_v31 }
  0x56   :  { %1775 = vmatpush3.msra.mxu0 %v3177_v63  ;;  %664 = vmatmul.mubr.f32.vlgmr.msra.gmra.mxu1 %v3178_v35 }
  0x57   :  { %1776 = vmatprep.subr.mxu0 %v3179_v43  ;;  %1803 = vmatprep.subr.mxu1 %v1869_v3  ;;  %v3184_v3 = vand.u32 4294901760, %v2116_v6  ;;  %v2550_v6 = vand.u32 4294901760, %v63_v8  ;;  %v57_v43 = vld [vmem:[%s3038_s1 + $0x138] sm:$0xff] }
  0x58   :  { %1777 = vmatpush3.msra.mxu0 %v3180_v40  ;;  %1804 = vmatpush3.msra.mxu1 %v1871_v4  ;;  %v3185_v4 = vand.u32 4294901760, %v2143_v55  ;;  %v3194_v55 = vand.u32 4294901760, %v2293_v36 }
  0x59   :  { %1778 = vmatprep.subr.mxu0 %v3181_v45  ;;  %1805 = vmatprep.subr.mxu1 %v1873_v5  ;;  %v3186_v5 = vand.u32 4294901760, %v2159_v28  ;;  %v62_v28 = vld [vmem:[%s3038_s1 + $0x160] sm:$0xff] }
  0x5a   :  { %1779 = vmatpush3.msra.mxu0 %v3182_v59  ;;  %1806 = vmatpush3.msra.mxu1 %v1884_v9  ;;  %v3187_v9 = vand.u32 4294901760, %v2183_v34  ;;  %v64_v34 = vld [vmem:[%s3038_s1 + $0x170] sm:$0xff]  ;;  %v2573_v13 = vand.u32 4294901760, %v62_v28 }
  0x5b   :  { %1780 = vmatprep.subr.mxu0 %v3183_v0  ;;  %1807 = vmatprep.subr.mxu1 %v1886_v10  ;;  %v3188_v10 = vand.u32 4294901760, %v2199_v46  ;;  %v2545_v36 = vand.u32 4294901760, %v64_v34  ;;  %v56_v59 = vld [vmem:[%s3038_s1 + $0x130] sm:$0xff] }
  0x5c   :  { %1781 = vmatpush3.msra.mxu0 %v3184_v3  ;;  %1808 = vmatpush3.msra.mxu1 %v1888_v11  ;;  %v3189_v11 = vand.u32 4294901760, %v2211_v60  ;;  %v2600_v18 = vsub.f32 %v62_v28, %v2573_v13 }
  0x5d   :  { %1782 = vmatprep.subr.mxu0 %v3185_v4  ;;  %1809 = vmatprep.subr.mxu1 %v1900_v15  ;;  %v3190_v15 = vand.u32 4294901760, %v3151_v33  ;;  %v3204_v33 = vand.u32 4294901760, %v3203_v62  ;;  %v16_v62 = vld [vmem:[%s3039_s0 + $0x10] sm:$0xff] }
  0x5e   :  { %1783 = vmatpush3.msra.mxu0 %v3186_v5  ;;  %1810 = vmatpush3.msra.mxu1 %v1902_v16  ;;  %v3191_v16 = vand.u32 4294901760, %v3153_v51  ;;  %v3206_v51 = vld [vmem:[#allocation25_spill] sm:$0xff]  ;;  %v55_v5 = vld [vmem:[%s3038_s1 + $0x128] sm:$0xff] }
  0x5f   :  { %1784 = vmatprep.subr.mxu0 %v3187_v9  ;;  %1811 = vmatprep.subr.mxu1 %v1904_v17  ;;  %v65_v17 = vld [vmem:[%s3038_s1 + $0x178] sm:$0xff] }
  0x60   :  { %1785 = vmatpush3.msra.mxu0 %v3188_v10  ;;  %1812 = vmatpush3.msra.mxu1 %v1926_v22  ;;  %v3192_v22 = vand.u32 4294901760, %v2254_v1  ;;  %v2534_v60 = vand.u32 4294901760, %v65_v17  ;;  %v61_v1 = vld [vmem:[%s3038_s1 + $0x158] sm:$0xff]  ;;  %v2665_v10 = vand.u32 4294901760, %v56_v59 }
  0x61   :  { %1786 = vmatprep.subr.mxu0 %v3189_v11  ;;  %1813 = vmatprep.subr.mxu1 %v1932_v24  ;;  %v3193_v24 = vand.u32 4294901760, %v2279_v53  ;;  %v3198_v53 = vand.u32 4294901760, %v2338_v61  ;;  %v2571_v61 = vsub.f32 %v64_v34, %v2545_v36  ;;  %v17_v34 = vld [vmem:[%s3039_s0 + $0x18] sm:$0xff] }
  0x62   :  { %1787 = vmatpush3.msra.mxu0 %v3190_v15  ;;  %1814 = vmatpush3.msra.mxu1 %v3152_v20  ;;  %v2559_v46 = vsub.f32 %v65_v17, %v2534_v60  ;;  %v2584_v20 = vand.u32 4294901760, %v61_v1 }
  0x63   :  { %1788 = vmatprep.subr.mxu0 %v3191_v16  ;;  %1815 = vmatprep.subr.mxu1 %v3154_v7  ;;  %v3207_v7 = vand.u32 4294901760, %v3206_v51  ;;  %v1049_v23 = vand.u32 4294901760, %v2571_v61  ;;  %v54_v16 = vld [vmem:[%s3038_s1 + $0x120] sm:$0xff] }
  0x64   :  { %1789 = vmatpush3.msra.mxu0 %v3192_v22  ;;  %1816 = vmatpush3.msra.mxu1 %v3155_v49  ;;  %v3208_v49 = vld [vmem:[#allocation21_spill] sm:$0xff]  ;;  %v2606_v25 = vsub.f32 %v61_v1, %v2584_v20  ;;  %v2679_v22 = vand.u32 4294901760, %v55_v5  ;;  %v77_v1 = vsel %vm75_vm0, %v17_v34, 0 }
  0x65   :  { %1790 = vmatprep.subr.mxu0 %v3193_v24  ;;  %1817 = vmatprep.subr.mxu1 %v3156_v50  ;;  %v1042_v50 = vand.u32 4294901760, %v2559_v46 }
  0x66   :  { %1791 = vmatpush3.msra.mxu0 %v3194_v55  ;;  %1818 = vmatpush3.msra.mxu1 %v3157_v37  ;;  %v3209_v37 = vld [vmem:[#allocation14_spill] sm:$0xff] }
  0x67   :  { %1792 = vmatprep.subr.mxu0 %v3195_v42  ;;  %1819 = vmatprep.subr.mxu1 %v3158_v2  ;;  %v3210_v2 = vld [vmem:[#allocation22_spill] sm:$0xff]  ;;  %v1043_v63 = vsub.f32 %v2559_v46, %v1042_v50 }
  0x68   :  { %1793 = vmatpush3.msra.mxu0 %v3196_v48  ;;  %1820 = vmatpush3.msra.mxu1 %v3159_v56  ;;  %v2592_v56 = vand.u32 4294901760, %v60_v54  ;;  %v2695_v48 = vsub.f32 %v56_v59, %v2665_v10 }
  0x69   :  { %1794 = vmatprep.subr.mxu0 %v3197_v21  ;;  %1821 = vmatprep.subr.mxu1 %v3160_v27  ;;  %v59_v27 = vld [vmem:[%s3038_s1 + $0x148] sm:$0xff]  ;;  %v1044_v0 = vand.u32 4294901760, %v1043_v63  ;;  %v2697_v21 = vand.u32 4294901760, %v54_v16 }
  0x6a   :  { %1795 = vmatpush3.msra.mxu0 %v3198_v53  ;;  %1822 = vmatpush3.msra.mxu1 %v3161_v47  ;;  %v1839_v47 = vmov 0.0   ;;  %v2622_v35 = vsub.f32 %v60_v54, %v2592_v56  ;;  %v52_v54 = vld [vmem:[%s3038_s1 + $0x110] sm:$0xff] }
  0x6b   :  { %1796 = vmatprep.subr.mxu0 %v3199_v57  ;;  %1823 = vmatprep.subr.mxu1 %v3162_v44  ;;  %v2582_v44 = vsub.f32 %v63_v8, %v2550_v6  ;;  %v53_v8 = vld [vmem:[%s3038_s1 + $0x118] sm:$0xff]  ;;  %v2704_v57 = vsub.f32 %v55_v5, %v2679_v22 }
  0x6c   :  { %1797 = vmatpush3.msra.mxu0 %v3201_v32  ;;  %1824 = vmatpush3.msra.mxu1 %v3202_v19  ;;  %v1077_v4 = vand.u32 4294901760, %v2622_v35  ;;  %v2709_v32 = vand.u32 4294901760, %v53_v8 }
  0x6d   :  { %1798 = vmatprep.subr.mxu0 %v3204_v33  ;;  %1825 = vmatprep.subr.mxu1 %v3205_v41  ;;  %v1056_v31 = vand.u32 4294901760, %v2582_v44  ;;  %v2722_v41 = vsub.f32 %v54_v16, %v2697_v21 }
  0x6e   :  { %1799 = vmatpush3.msra.mxu0 %v3207_v7  ;;  %830 = vmatprep.mubr.f32.mxu0 %v3208_v49  ;;  %v1078_v55 = vsub.f32 %v2622_v35, %v1077_v4  ;;  %v3115_v7 = vand.u32 4294901760, %v2695_v48  ;;  %v2741_v63 = vsub.f32 %v53_v8, %v2709_v32 }
  0x6f   :  { %1826 = vmatpush3.msra.mxu1 %v3209_v37  ;;  %832 = vmatmul.mubr.f32.vlgmr.msra.gmra.mxu0 %v3210_v2  ;;  %v1057_v45 = vsub.f32 %v2582_v44, %v1056_v31  ;;  %v2731_v37 = vand.u32 4294901760, %v77_v1 }
  0x70   :  { %1827 = vmatprep.subr.mxu1 %v2172_v39  ;;  %941 = vmatprep.subr.mxu0 %v1839_v47  ;;  %v58_v39 = vld [vmem:[%s3038_s1 + $0x140] sm:$0xff]  ;;  %v1079_v33 = vand.u32 4294901760, %v1078_v55  ;;  %v1106_v5 = vsub.f32 %v2695_v48, %v3115_v7 }
  0x71   :  { %1828 = vmatpush3.msra.mxu1 %v3166_v26  ;;  %943 = vmatpush1.msra.mxu0 %v2534_v60  ;;  %v2617_v26 = vand.u32 4294901760, %v59_v27  ;;  %v2632_v40 = vand.u32 4294901760, %v58_v39  ;;  %v1058_v11 = vand.u32 4294901760, %v1057_v45  ;;  %v50_v45 = vld [vmem:[%s3038_s1 + $0x100] sm:$0xff] }
  0x72   :  { %1829 = vmatprep.subr.mxu1 %v3168_v12  ;;  %944 = vmatprep.subr.mxu0 %v1839_v47  ;;  %v1050_v12 = vsub.f32 %v2571_v61, %v1049_v23  ;;  %v2770_v16 = vand.u32 4294901760, %v50_v45 }
  0x73   :  { %1830 = vmatpush3.msra.mxu1 %v3170_v29  ;;  %946 = vmatpush1.msra.mxu0 %v2545_v36  ;;  %v1063_v29 = vand.u32 4294901760, %v2600_v18  ;;  %v2647_v3 = vsub.f32 %v59_v27, %v2617_v26  ;;  %v2660_v9 = vsub.f32 %v58_v39, %v2632_v40  ;;  %v2737_v27 = vand.u32 4294901760, %v16_v62 }
  0x74   :  { %1831 = vmatprep.subr.mxu1 %v3172_v14  ;;  %947 = vmatprep.subr.mxu0 %v1839_v47  ;;  %v1070_v14 = vand.u32 4294901760, %v2606_v25 }
  0x75   :  { %1832 = vmatpush3.msra.mxu1 %v2250_v38  ;;  %949 = vmatpush1.msra.mxu0 %v2550_v6  ;;  %v2649_v38 = vand.u32 4294901760, %v57_v43  ;;  %v1084_v24 = vand.u32 4294901760, %v2647_v3  ;;  %v3117_v28 = vand.u32 4294901760, %v2660_v9  ;;  %v2773_v34 = vsub.f32 %v16_v62, %v2737_v27 }
  0x76   :  { %1833 = vmatprep.subr.mxu1 %v2267_v52  ;;  %950 = vmatprep.subr.mxu0 %v1839_v47  ;;  %v1051_v52 = vand.u32 4294901760, %v1050_v12  ;;  %v1071_v15 = vsub.f32 %v2606_v25, %v1070_v14  ;;  %v3112_v12 = vand.u32 4294901760, %v2704_v57 }
  0x77   :  { %1834 = vmatpush3.msra.mxu1 %v2289_v58  ;;  %934 = vmatprep.mubr.f32.mxu1 %v3208_v49  ;;  %v1064_v58 = vsub.f32 %v2600_v18, %v1063_v29  ;;  %v2677_v17 = vsub.f32 %v57_v43, %v2649_v38  ;;  %v1085_v30 = vsub.f32 %v2647_v3, %v1084_v24  ;;  %v51_v49 = vld [vmem:[%s3038_s1 + $0x108] sm:$0xff] }
  0x78   :  { %952 = vmatpush1.msra.mxu0 %v2573_v13  ;;  %936 = vmatmul.mubr.f32.vlgmr.msra.gmra.mxu1 %v3210_v2  ;;  %v1072_v53 = vand.u32 4294901760, %v1071_v15  ;;  %v1092_v51 = vsub.f32 %v2660_v9, %v3117_v28  ;;  %v2735_v2 = vand.u32 4294901760, %v52_v54  ;;  %v2752_v59 = vand.u32 4294901760, %v51_v49 }
  0x79   :  { %953 = vmatprep.subr.mxu0 %v1839_v47  ;;  %1039 = vmatprep.subr.mxu1 %v1839_v47  ;;  %v1065_v42 = vand.u32 4294901760, %v1064_v58  ;;  %v3116_v19 = vand.u32 4294901760, %v2677_v17  ;;  %v1086_v39 = vand.u32 4294901760, %v1085_v30  ;;  %v67_v58 = vld [vmem:[%s3038_s1 + $0x188] sm:$0xff]  ;;  %v1113_v8 = vsub.f32 %v2704_v57, %v3112_v12 }
  0x7a   :  { %955 = vmatpush1.msra.mxu0 %v2584_v20  ;;  %1045 = vmatpush1.msra.mxu1 %v1044_v0  ;;  %v1093_v0 = vand.u32 4294901760, %v1092_v51  ;;  %v2768_v15 = vsub.f32 %v52_v54, %v2735_v2  ;;  %v2788_v30 = vand.u32 4294901760, %v67_v58  ;;  %v1107_v54 = vand.u32 4294901760, %v1106_v5 }
  0x7b   :  { %956 = vmatprep.subr.mxu0 %v1839_v47  ;;  %1046 = vmatprep.subr.mxu1 %v1839_v47  ;;  %v1099_v43 = vsub.f32 %v2677_v17, %v3116_v19  ;;  %v2798_v51 = vsub.f32 %v50_v45, %v2770_v16 }
  0x7c   :  { %958 = vmatpush1.msra.mxu0 %v2592_v56  ;;  %1052 = vmatpush1.msra.mxu1 %v1051_v52  ;;  %v3111_v52 = vand.u32 4294901760, %v2722_v41  ;;  %v2811_v45 = vsub.f32 %v67_v58, %v2788_v30 }
  0x7d   :  { %959 = vmatprep.subr.mxu0 %v1839_v47  ;;  %1053 = vmatprep.subr.mxu1 %v1839_v47  ;;  %v1100_v55 = vand.u32 4294901760, %v1099_v43  ;;  %v1031_v43 = vand.u32 4294901760, %v2773_v34 }
  0x7e   :  { %961 = vmatpush1.msra.mxu0 %v2617_v26  ;;  %1059 = vmatpush1.msra.mxu1 %v1058_v11  ;;  %v2763_v11 = vsub.f32 %v77_v1, %v2731_v37  ;;  %v2786_v1 = vsub.f32 %v51_v49, %v2752_v59  ;;  %v1120_v62 = vsub.f32 %v2722_v41, %v3111_v52 }
  0x7f   :  { %962 = vmatprep.subr.mxu0 %v1839_v47  ;;  %1060 = vmatprep.subr.mxu1 %v1839_v47 }
  0x80   :  { %964 = vmatpush1.msra.mxu0 %v2632_v40  ;;  %1066 = vmatpush1.msra.mxu1 %v1065_v42  ;;  %v3113_v42 = vand.u32 4294901760, %v2741_v63  ;;  %v1140_v52 = vand.u32 4294901760, %v2786_v1  ;;  %v1121_v12 = vand.u32 4294901760, %v1120_v62  ;;  %v1147_v62 = vand.u32 4294901760, %v2798_v51 }
  0x81   :  { %965 = vmatprep.subr.mxu0 %v1839_v47  ;;  %1067 = vmatprep.subr.mxu1 %v1839_v47 }
  0x82   :  { %967 = vmatpush1.msra.mxu0 %v2649_v38  ;;  %1073 = vmatpush1.msra.mxu1 %v1072_v53  ;;  %v66_v53 = vld [vmem:[%s3038_s1 + $0x180] sm:$0xff]  ;;  %v1127_v5 = vsub.f32 %v2741_v63, %v3113_v42  ;;  %v1148_v19 = vsub.f32 %v2798_v51, %v1147_v62 }
  0x83   :  { %968 = vmatprep.subr.mxu0 %v1839_v47  ;;  %1074 = vmatprep.subr.mxu1 %v1839_v47  ;;  %v2800_v49 = vand.u32 4294901760, %v66_v53 }
  0x84   :  { %970 = vmatpush1.msra.mxu0 %v2665_v10  ;;  %1080 = vmatpush1.msra.mxu1 %v1079_v33  ;;  %v1025_v33 = vand.u32 4294901760, %v2763_v11  ;;  %v1128_v42 = vand.u32 4294901760, %v1127_v5 }
  0x85   :  { %971 = vmatprep.subr.mxu0 %v1839_v47  ;;  %1081 = vmatprep.subr.mxu1 %v1839_v47 }
  0x86   :  { %973 = vmatpush1.msra.mxu0 %v2679_v22  ;;  %1087 = vmatpush1.msra.mxu1 %v1086_v39  ;;  %v3114_v39 = vand.u32 4294901760, %v2768_v15 }
  0x87   :  { %974 = vmatprep.subr.mxu0 %v1839_v47  ;;  %1088 = vmatprep.subr.mxu1 %v1839_v47 }
  0x88   :  { %976 = vmatpush1.msra.mxu0 %v2697_v21  ;;  %1094 = vmatpush1.msra.mxu1 %v1093_v0  ;;  %v1114_v0 = vand.u32 4294901760, %v1113_v8  ;;  %v2821_v8 = vsub.f32 %v66_v53, %v2800_v49  ;;  %v1134_v58 = vsub.f32 %v2768_v15, %v3114_v39  ;;  %v1141_v53 = vsub.f32 %v2786_v1, %v1140_v52 }
  0x89   :  { %977 = vmatprep.subr.mxu0 %v1839_v47  ;;  %1095 = vmatprep.subr.mxu1 %v1839_v47  ;;  %v1182_v39 = vand.u32 4294901760, %v2811_v45 }
  0x8a   :  { %979 = vmatpush1.msra.mxu0 %v2709_v32  ;;  %1101 = vmatpush1.msra.mxu1 %v1100_v55  ;;  %v1026_v55 = vsub.f32 %v2763_v11, %v1025_v33  ;;  %v1189_v28 = vand.u32 4294901760, %v2821_v8 }
  0x8b   :  { %980 = vmatprep.subr.mxu0 %v1839_v47  ;;  %1102 = vmatprep.subr.mxu1 %v1839_v47 }
  0x8c   :  { %982 = vmatpush1.msra.mxu0 %v2735_v2  ;;  %1108 = vmatpush1.msra.mxu1 %v1107_v54  ;;  %v1032_v54 = vsub.f32 %v2773_v34, %v1031_v43  ;;  %v1027_v7 = vand.u32 4294901760, %v1026_v55  ;;  %v1183_v55 = vsub.f32 %v2811_v45, %v1182_v39 }
  0x8d   :  { %983 = vmatprep.subr.mxu0 %v1839_v47  ;;  %1109 = vmatprep.subr.mxu1 %v1839_v47 }
  0x8e   :  { %985 = vmatpush1.msra.mxu0 %v2752_v59  ;;  %1115 = vmatpush1.msra.mxu1 %v1114_v0  ;;  %v1135_v0 = vand.u32 4294901760, %v1134_v58  ;;  %v1033_v5 = vand.u32 4294901760, %v1032_v54  ;;  %v1149_v58 = vand.u32 4294901760, %v1148_v19  ;;  %v1190_v54 = vsub.f32 %v2821_v8, %v1189_v28 }
  0x8f   :  { %986 = vmatprep.subr.mxu0 %v1839_v47  ;;  %1116 = vmatprep.subr.mxu1 %v1839_v47 }
  0x90   :  { %988 = vmatpush1.msra.mxu0 %v2770_v16  ;;  %1122 = vmatpush1.msra.mxu1 %v1121_v12  ;;  %v1142_v12 = vand.u32 4294901760, %v1141_v53  ;;  %v1191_v19 = vand.u32 4294901760, %v1190_v54 }
  0x91   :  { %1017 = vmatprep.subr.mxu0 %v1839_v47  ;;  %1123 = vmatprep.subr.mxu1 %v1839_v47 }
  0x92   :  { %1019 = vmatpush2.msra.mxu0 %v2788_v30  ;;  %1129 = vmatpush1.msra.mxu1 %v1128_v42  ;;  %v1184_v42 = vand.u32 4294901760, %v1183_v55 }
  0x93   :  { %1020 = vmatprep.subr.mxu0 %v1839_v47  ;;  %1130 = vmatprep.subr.mxu1 %v1839_v47 }
  0x94   :  { %1022 = vmatpush2.msra.mxu0 %v2800_v49  ;;  %1028 = vmatprep.mubr.f32.mxu0 %v1027_v7 }
  0x95   :  { %1136 = vmatpush1.msra.mxu1 %v1135_v0  ;;  %1034 = vmatmul.mubr.f32.vlgmr.msra.gmra.mxu0 %v1033_v5 }
  0x96   :  { %1137 = vmatprep.subr.mxu1 %v1839_v47  ;;  %1201 = vmatprep.subr.mxu0 %v1839_v47 }
  0x97   :  { %1143 = vmatpush1.msra.mxu1 %v1142_v12  ;;  %1204 = vmatpush1.msra.mxu0 %v2559_v46  ;;  %v3214_v46 = vand.u32 4294901760, %v2704_v57 }
  0x98   :  { %1144 = vmatprep.subr.mxu1 %v1839_v47  ;;  %1205 = vmatprep.subr.mxu0 %v1839_v47 }
  0x99   :  { %1150 = vmatpush1.msra.mxu1 %v1149_v58  ;;  %1208 = vmatpush1.msra.mxu0 %v2571_v61  ;;  %v3215_v61 = vand.u32 4294901760, %v2722_v41 }
  0x9a   :  { %1179 = vmatprep.subr.mxu1 %v1839_v47  ;;  %1209 = vmatprep.subr.mxu0 %v1839_v47 }
  0x9b   :  { %1185 = vmatpush2.msra.mxu1 %v1184_v42  ;;  %1212 = vmatpush1.msra.mxu0 %v2582_v44  ;;  %v3217_v44 = vand.u32 4294901760, %v2768_v15 }
  0x9c   :  { %1186 = vmatprep.subr.mxu1 %v1839_v47  ;;  %1213 = vmatprep.subr.mxu0 %v1839_v47 }
  0x9d   :  { %1192 = vmatpush2.msra.mxu1 %v1191_v19  ;;  %1194 = vmatprep.mubr.f32.mxu1 %v2731_v37 }
  0x9e   :  { %1216 = vmatpush1.msra.mxu0 %v2600_v18  ;;  %1196 = vmatmul.mubr.f32.vlgmr.msra.gmra.mxu1 %v2737_v27  ;;  %v1627_v18 = vld [vmem:[%s3040_s2] ss:$0 sm:$0xff] }
  0x9f   :  { %1217 = vmatprep.subr.mxu0 %v1839_v47  ;;  %1311 = vmatprep.subr.mxu1 %v1839_v47 }
  0xa0   :  { %1220 = vmatpush1.msra.mxu0 %v2606_v25  ;;  %1313 = vmatpush1.msra.mxu1 %v2534_v60 }
  0xa1   :  { %1221 = vmatprep.subr.mxu0 %v1839_v47  ;;  %1314 = vmatprep.subr.mxu1 %v1839_v47 }
  0xa2   :  { %1224 = vmatpush1.msra.mxu0 %v2622_v35  ;;  %1316 = vmatpush1.msra.mxu1 %v2545_v36 }
  0xa3   :  { %1225 = vmatprep.subr.mxu0 %v1839_v47  ;;  %1317 = vmatprep.subr.mxu1 %v1839_v47 }
  0xa4   :  { %1228 = vmatpush1.msra.mxu0 %v2647_v3  ;;  %1319 = vmatpush1.msra.mxu1 %v2550_v6 }
  0xa5   :  { %1229 = vmatprep.subr.mxu0 %v1839_v47  ;;  %1320 = vmatprep.subr.mxu1 %v1839_v47 }
  0xa6   :  { %1232 = vmatpush1.msra.mxu0 %v2660_v9  ;;  %1322 = vmatpush1.msra.mxu1 %v2573_v13 }
  0xa7   :  { %1233 = vmatprep.subr.mxu0 %v1839_v47  ;;  %1323 = vmatprep.subr.mxu1 %v1839_v47 }
  0xa8   :  { %1236 = vmatpush1.msra.mxu0 %v2677_v17  ;;  %1325 = vmatpush1.msra.mxu1 %v2584_v20 }
  0xa9   :  { %1237 = vmatprep.subr.mxu0 %v1839_v47  ;;  %1326 = vmatprep.subr.mxu1 %v1839_v47 }
  0xaa   :  { %1240 = vmatpush1.msra.mxu0 %v2695_v48  ;;  %1328 = vmatpush1.msra.mxu1 %v2592_v56 }
  0xab   :  { %1241 = vmatprep.subr.mxu0 %v1839_v47  ;;  %1329 = vmatprep.subr.mxu1 %v1839_v47 }
  0xac   :  { %1244 = vmatpush1.msra.mxu0 %v2704_v57  ;;  %1331 = vmatpush1.msra.mxu1 %v2617_v26 }
  0xad   :  { %1245 = vmatprep.subr.mxu0 %v1839_v47  ;;  %1332 = vmatprep.subr.mxu1 %v1839_v47 }
  0xae   :  { %1248 = vmatpush1.msra.mxu0 %v2722_v41  ;;  %1334 = vmatpush1.msra.mxu1 %v2632_v40 }
  0xaf   :  { %1249 = vmatprep.subr.mxu0 %v1839_v47  ;;  %1335 = vmatprep.subr.mxu1 %v1839_v47 }
  0xb0   :  { %1252 = vmatpush1.msra.mxu0 %v2741_v63  ;;  %1337 = vmatpush1.msra.mxu1 %v2649_v38 }
  0xb1   :  { %1253 = vmatprep.subr.mxu0 %v1839_v47  ;;  %1338 = vmatprep.subr.mxu1 %v1839_v47 }
  0xb2   :  { %1256 = vmatpush1.msra.mxu0 %v2768_v15  ;;  %1340 = vmatpush1.msra.mxu1 %v2665_v10 }
  0xb3   :  { %1257 = vmatprep.subr.mxu0 %v1839_v47  ;;  %1341 = vmatprep.subr.mxu1 %v1839_v47 }
  0xb4   :  { %1260 = vmatpush1.msra.mxu0 %v2786_v1  ;;  %1343 = vmatpush1.msra.mxu1 %v2679_v22 }
  0xb5   :  { %1261 = vmatprep.subr.mxu0 %v1839_v47  ;;  %1344 = vmatprep.subr.mxu1 %v1839_v47 }
  0xb6   :  { %1264 = vmatpush1.msra.mxu0 %v2798_v51  ;;  %1346 = vmatpush1.msra.mxu1 %v2697_v21 }
  0xb7   :  { %1293 = vmatprep.subr.mxu0 %v1839_v47  ;;  %1347 = vmatprep.subr.mxu1 %v1839_v47 }
  0xb8   :  { %1296 = vmatpush2.msra.mxu0 %v2811_v45  ;;  %1349 = vmatpush1.msra.mxu1 %v2709_v32 }
  0xb9   :  { %1297 = vmatprep.subr.mxu0 %v1839_v47  ;;  %1350 = vmatprep.subr.mxu1 %v1839_v47 }
  0xba   :  { %1300 = vmatpush2.msra.mxu0 %v2821_v8  ;;  %1303 = vmatprep.mubr.f32.mxu0 %v2763_v11 }
  0xbb   :  { %1352 = vmatpush1.msra.mxu1 %v2735_v2  ;;  %1306 = vmatmul.mubr.f32.vlgmr.msra.gmra.mxu0 %v2773_v34 }
  0xbc   :  { %1353 = vmatprep.subr.mxu1 %v1839_v47  ;;  %1405 = vmatprep.subr.mxu0 %v1839_v47 }
  0xbd   :  { %1355 = vmatpush1.msra.mxu1 %v2752_v59  ;;  %1409 = vmatpush1.msra.mxu0 %v1042_v50 }
  0xbe   :  { %1356 = vmatprep.subr.mxu1 %v1839_v47  ;;  %1410 = vmatprep.subr.mxu0 %v1839_v47 }
  0xbf   :  { %1358 = vmatpush1.msra.mxu1 %v2770_v16  ;;  %1414 = vmatpush1.msra.mxu0 %v1049_v23 }
  0xc0   :  { %1387 = vmatprep.subr.mxu1 %v1839_v47  ;;  %1415 = vmatprep.subr.mxu0 %v1839_v47 }
  0xc1   :  { %1389 = vmatpush2.msra.mxu1 %v2788_v30  ;;  %1419 = vmatpush1.msra.mxu0 %v1056_v31 }
  0xc2   :  { %1390 = vmatprep.subr.mxu1 %v1839_v47  ;;  %1420 = vmatprep.subr.mxu0 %v1839_v47 }
  0xc3   :  { %1392 = vmatpush2.msra.mxu1 %v2800_v49  ;;  %1396 = vmatprep.mubr.f32.mxu1 %v1025_v33 }
  0xc4   :  { %1424 = vmatpush1.msra.mxu0 %v1063_v29  ;;  %1400 = vmatmul.mubr.f32.vlgmr.msra.gmra.mxu1 %v1031_v43 }
  0xc5   :  { %1425 = vmatprep.subr.mxu0 %v1839_v47  ;;  %1531 = vmatprep.subr.mxu1 %v1839_v47 }
  0xc6   :  { %1429 = vmatpush1.msra.mxu0 %v1070_v14  ;;  %1533 = vmatpush1.msra.mxu1 %v2534_v60  ;;  %v3211_v60 = vand.u32 4294901760, %v2660_v9 }
  0xc7   :  { %1430 = vmatprep.subr.mxu0 %v1839_v47  ;;  %1534 = vmatprep.subr.mxu1 %v1839_v47 }
  0xc8   :  { %1434 = vmatpush1.msra.mxu0 %v1077_v4  ;;  %1536 = vmatpush1.msra.mxu1 %v2545_v36  ;;  %v3212_v36 = vand.u32 4294901760, %v2677_v17 }
  0xc9   :  { %1435 = vmatprep.subr.mxu0 %v1839_v47  ;;  %1537 = vmatprep.subr.mxu1 %v1839_v47 }
  0xca   :  { %1439 = vmatpush1.msra.mxu0 %v1084_v24  ;;  %1539 = vmatpush1.msra.mxu1 %v2550_v6  ;;  %v3213_v6 = vand.u32 4294901760, %v2695_v48 }
  0xcb   :  { %1440 = vmatprep.subr.mxu0 %v1839_v47  ;;  %1540 = vmatprep.subr.mxu1 %v1839_v47 }
  0xcc   :  { %1444 = vmatpush1.msra.mxu0 %v3211_v60  ;;  %1542 = vmatpush1.msra.mxu1 %v2573_v13  ;;  %v3216_v13 = vand.u32 4294901760, %v2741_v63 }
  0xcd   :  { %1445 = vmatprep.subr.mxu0 %v1839_v47  ;;  %1543 = vmatprep.subr.mxu1 %v1839_v47 }
  0xce   :  { %1449 = vmatpush1.msra.mxu0 %v3212_v36  ;;  %1545 = vmatpush1.msra.mxu1 %v2584_v20 }
  0xcf   :  { %1450 = vmatprep.subr.mxu0 %v1839_v47  ;;  %1546 = vmatprep.subr.mxu1 %v1839_v47 }
  0xd0   :  { %1454 = vmatpush1.msra.mxu0 %v3213_v6  ;;  %1548 = vmatpush1.msra.mxu1 %v2592_v56 }
  0xd1   :  { %1455 = vmatprep.subr.mxu0 %v1839_v47  ;;  %1549 = vmatprep.subr.mxu1 %v1839_v47 }
  0xd2   :  { %1459 = vmatpush1.msra.mxu0 %v3214_v46  ;;  %1551 = vmatpush1.msra.mxu1 %v2617_v26 }
  0xd3   :  { %1460 = vmatprep.subr.mxu0 %v1839_v47  ;;  %1552 = vmatprep.subr.mxu1 %v1839_v47 }
  0xd4   :  { %1464 = vmatpush1.msra.mxu0 %v3215_v61  ;;  %1554 = vmatpush1.msra.mxu1 %v2632_v40 }
  0xd5   :  { %1465 = vmatprep.subr.mxu0 %v1839_v47  ;;  %1555 = vmatprep.subr.mxu1 %v1839_v47 }
  0xd6   :  { %1469 = vmatpush1.msra.mxu0 %v3216_v13  ;;  %1557 = vmatpush1.msra.mxu1 %v2649_v38 }
  0xd7   :  { %1470 = vmatprep.subr.mxu0 %v1839_v47  ;;  %1558 = vmatprep.subr.mxu1 %v1839_v47 }
  0xd8   :  { %1474 = vmatpush1.msra.mxu0 %v3217_v44  ;;  %1560 = vmatpush1.msra.mxu1 %v2665_v10 }
  0xd9   :  { %1475 = vmatprep.subr.mxu0 %v1839_v47  ;;  %1561 = vmatprep.subr.mxu1 %v1839_v47 }
  0xda   :  { %1479 = vmatpush1.msra.mxu0 %v1140_v52  ;;  %1563 = vmatpush1.msra.mxu1 %v2679_v22 }
  0xdb   :  { %1480 = vmatprep.subr.mxu0 %v1839_v47  ;;  %1564 = vmatprep.subr.mxu1 %v1839_v47 }
  0xdc   :  { %1484 = vmatpush1.msra.mxu0 %v1147_v62  ;;  %1566 = vmatpush1.msra.mxu1 %v2697_v21 }
  0xdd   :  { %1513 = vmatprep.subr.mxu0 %v1839_v47  ;;  %1567 = vmatprep.subr.mxu1 %v1839_v47 }
  0xde   :  { %1517 = vmatpush2.msra.mxu0 %v1182_v39  ;;  %1569 = vmatpush1.msra.mxu1 %v2709_v32 }
  0xdf   :  { %1518 = vmatprep.subr.mxu0 %v1839_v47  ;;  %1570 = vmatprep.subr.mxu1 %v1839_v47 }
  0xe0   :  { %1522 = vmatpush2.msra.mxu0 %v1189_v28  ;;  %1524 = vmatprep.mubr.f32.mxu0 %v2731_v37 }
  0xe1   :  { %1572 = vmatpush1.msra.mxu1 %v2735_v2  ;;  %1526 = vmatmul.mubr.f32.vlgmr.msra.gmra.mxu0 %v2737_v27 }
  0xe2   :  { %1573 = vmatprep.subr.mxu1 %v1839_v47  ;;  %1614 = vmatprep.mubr.f32.mxu1 %v2731_v37 }
  0xe3   :  { %1575 = vmatpush1.msra.mxu1 %v2752_v59 }
  0xe4   :  { %1576 = vmatprep.subr.mxu1 %v1839_v47 }
  0xe5   :  { %1578 = vmatpush1.msra.mxu1 %v2770_v16 }
  0xe6   :  { %1607 = vmatprep.subr.mxu1 %v1839_v47 }
  0xe7   :  { %1609 = vmatpush2.msra.mxu1 %v2788_v30 }
  0xe8   :  { %1610 = vmatprep.subr.mxu1 %v1839_v47 }
  0xe9   :  { %1612 = vmatpush2.msra.mxu1 %v2800_v49 }
  0xea   :  { %1616 = vmatmul.mubr.f32.vlgmr.msra.gmra.mxu1 %v2737_v27 }
  0xec   :  { %v1660_v20 = vpop.f32.mrf.mxu0 }
  0xee   :  { %v1661_v50 = vpop.f32.mrf.mxu0 }
  0xef   :  { %v1662_v56 = vadd.f32 %v1661_v50, %v1660_v20 }
  0xf1   :  { %v188_v25 = vadd.f32 %v1662_v56, %v1627_v18 }
  0xf5   :  { %v1695_v23 = vpop.f32.mrf.mxu1 }
  0xf7   :  { %v1696_v31 = vpop.f32.mrf.mxu1 }
  0xf8   :  { %v1697_v26 = vadd.f32 %v1696_v31, %v1695_v23 }
  0xfa   :  { %v420_v35 = vadd.f32 %v1697_v26, %v188_v25 }
 0x10d   :  { %v1730_v40 = vpop.f32.mrf.mxu0 }
 0x10f   :  { %v1731_v29 = vpop.f32.mrf.mxu0 }
 0x110   :  { %v1732_v14 = vadd.f32 %v1731_v29, %v1730_v40 }
 0x112   :  { %v558_v47 = vadd.f32 %v1732_v14, %v420_v35 }
 0x116   :  { %v1765_v3 = vpop.f32.mrf.mxu1 }
 0x118   :  { %v1766_v38 = vpop.f32.mrf.mxu1 }
 0x119   :  { %v1767_v4 = vadd.f32 %v1766_v38, %v1765_v3 }
 0x11b   :  { %v666_v9 = vadd.f32 %v1767_v4, %v558_v47 }
 0x12f   :  { %v1800_v10 = vpop.f32.mrf.mxu0 }
 0x131   :  { %v1801_v17 = vpop.f32.mrf.mxu0 }
 0x132   :  { %v1802_v22 = vadd.f32 %v1801_v17, %v1800_v10 }
 0x134   :  { %v834_v24 = vadd.f32 %v1802_v22, %v666_v9 }
 0x138   :  { %v1835_v48 = vpop.f32.mrf.mxu1 }
 0x13a   :  { %v1836_v21 = vpop.f32.mrf.mxu1 }
 0x13b   :  { %v1837_v28 = vadd.f32 %v1836_v21, %v1835_v48 }
 0x13d   :  { %v938_v57 = vadd.f32 %v1837_v28, %v834_v24 }
 0x155   :  { %v1035_v32 = vpop.f32.mrf.mxu0 }
 0x156   :  { %v1036_v41 = vadd.f32 %v1035_v32, %v938_v57 }
 0x157   :  { %v1037_v7 = vpop.f32.mrf.mxu0 }
 0x15e   :  { %v1197_v37 = vpop.f32.mrf.mxu1 }
 0x15f   :  { %v1198_v2 = vadd.f32 %v1197_v37, %v1036_v41 }
 0x160   :  { %v1199_v27 = vpop.f32.mrf.mxu1 }
 0x17b   :  { %v1307_v63 = vpop.f32.mrf.mxu0 }
 0x17c   :  { %v1308_v34 = vadd.f32 %v1307_v63, %v1198_v2 }
 0x17d   :  { %v1309_v59 = vpop.f32.mrf.mxu0 }
 0x184   :  { %v1401_v52 = vpop.f32.mrf.mxu1 }
 0x185   :  { %v1402_v1 = vadd.f32 %v1401_v52, %v1308_v34 }
 0x186   :  { %v1403_v11 = vpop.f32.mrf.mxu1 }
 0x1a1   :  { %v1527_v15 = vpop.f32.mrf.mxu0 }
 0x1a2   :  { %v1528_v30 = vadd.f32 %v1527_v15, %v1402_v1 }
 0x1a3   :  { %v1529_v16 = vpop.f32.mrf.mxu0 }
 0x1aa   :  { %v1617_v33 = vpop.f32.mrf.mxu1 }
 0x1ab   :  { %v1618_v51 = vadd.f32 %v1617_v33, %v1528_v30 }
 0x1ac   :  { %v1619_v49 = vpop.f32.mrf.mxu1 }
 0x1ad   :  { %1622 = vst.msk [vmem:[%s3041_s3] sm:$0xff] %vm1621_vm1, %v1618_v51 }

</bundles_post_ra>
